<compile_context>
chip_gen: v7x
topology: tpu7x:2x2x1
jax: 0.10.0
libtpu: 0.0.40
codegen_flags: <defaults>
</compile_context>

<pallas_src>
import functools

import jax
import jax.numpy as jnp
from jax.experimental import pallas as pl
from jax.experimental.pallas import tpu as pltpu


def _round_up(x, m):
    return ((x + m - 1) // m) * m


def _contrastive_kernel(o1_ref, o2_ref, lbl_ref, loss_ref, corr_ref,
                        *, margin, thres):
    """Per-row contrastive loss terms + per-row correctness flags."""
    o1 = o1_ref[...].astype(jnp.float32)          # (tile_b, D)
    o2 = o2_ref[...].astype(jnp.float32)
    label = lbl_ref[...].astype(jnp.float32)      # (tile_b, 1)

    # F.pairwise_distance(x1, x2, p=2, eps=1e-6, keepdim=True):
    # eps is added to every element of the difference (no lane padding in HBM,
    # so no masking / correction is needed).
    diff = o1 - o2 + jnp.float32(1e-6)
    d2 = jnp.sum(diff * diff, axis=-1, keepdims=True)   # (tile_b, 1)
    d = jnp.sqrt(d2)

    # per-row loss term: (1-y) * d^2 / 2 + y * clamp(margin - d, 0)^2
    pos_term = (1.0 - label) * d2 * 0.5                   # reuse d2 (no re-square)
    neg_term = label * jnp.square(jnp.maximum(jnp.float32(margin) - d, 0.0))
    loss_ref[...] = pos_term + neg_term

    # per-row correctness: ((d > thres).float() == label).float()
    # NOTE: exact float equality, matching the PyTorch module; labels are
    # expected to be exactly 0.0 / 1.0.
    pred = (d > jnp.float32(thres)).astype(jnp.float32)
    corr_ref[...] = (pred == label).astype(jnp.float32)


def _pick_tile_b(batch, feat_dim, itemsize, budget_bytes):
    """Largest row-tile whose double-buffered VMEM footprint fits the budget."""
    d_lanes = _round_up(max(feat_dim, 1), 128)   # VMEM lane footprint of a row
    # Per batch-row VMEM bytes:
    #   o1 + o2 blocks (input dtype)               x 2 pipeline buffers
    #   label + 2 per-row outputs (f32, each block padded to 128 lanes) x 2
    #   + ~one f32 temporary slab for diff / diff*diff
    per_row = 2 * (2 * d_lanes * itemsize + 3 * 128 * 4) + 2 * d_lanes * 4
    tile_b = max(8, min(budget_bytes // per_row, 1 << 15))
    if tile_b >= batch:
        # Single block equal to the full array (always a legal block shape).
        return int(batch)
    tile_b = (tile_b // 8) * 8
    # Rebalance so the last (partial) block wastes at most 7 rows.
    n_tiles = -(-batch // tile_b)
    tile_b = _round_up(-(-batch // n_tiles), 8)
    return int(min(tile_b, _round_up(batch, 8)))


def contrastive_loss(output1, output2, label, *, margin=2.0, contrastive_thres=1.1):
    """Returns (loss, acc) as float32 scalars, matching the PyTorch module.

    `output1`/`output2` may be f32 or bf16; they are streamed in their native
    dtype and cast to f32 per-tile inside the kernel.
    """
    B, D = output1.shape
    assert output2.shape == (B, D)
    label = jnp.asarray(label).reshape(B, 1).astype(jnp.float32)

    itemsize = jnp.dtype(output1.dtype).itemsize

    # Generation-aware VMEM budget (v7x: 64 MiB physical, v5e/v6e: 128 MiB).
    try:
        vmem_cap = int(pltpu.get_tpu_info().vmem_capacity_bytes)
    except Exception:
        vmem_cap = 64 * 1024 * 1024   # conservative (v7x per-TC)
    budget = int(vmem_cap * 0.45)

    tile_b = _pick_tile_b(B, D, itemsize, budget)
    grid = (pl.cdiv(B, tile_b),)

    # Estimated pipeline VMEM need for this tile, used to set the scoped limit
    # (leave headroom below physical capacity on every generation).
    d_lanes = _round_up(D, 128)
    est = 2 * tile_b * (2 * d_lanes * itemsize + 3 * 128 * 4) \
        + 2 * tile_b * d_lanes * 4
    vmem_limit = int(min(int(vmem_cap * 0.9),
                         max(32 * 1024 * 1024, est + 8 * 1024 * 1024)))

    kernel = functools.partial(
        _contrastive_kernel,
        margin=float(margin), thres=float(contrastive_thres))

    per_row_loss, per_row_corr = pl.pallas_call(
        kernel,
        out_shape=(jax.ShapeDtypeStruct((B, 1), jnp.float32),
                   jax.ShapeDtypeStruct((B, 1), jnp.float32)),
        grid_spec=pltpu.PrefetchScalarGridSpec(
            num_scalar_prefetch=0,
            grid=grid,
            in_specs=[
                pl.BlockSpec((tile_b, D), lambda i: (i, 0)),
                pl.BlockSpec((tile_b, D), lambda i: (i, 0)),
                pl.BlockSpec((tile_b, 1), lambda i: (i, 0)),
            ],
            out_specs=(
                pl.BlockSpec((tile_b, 1), lambda i: (i, 0)),
                pl.BlockSpec((tile_b, 1), lambda i: (i, 0)),
            ),
        ),
        compiler_params=pltpu.CompilerParams(
            # Per-tile outputs are independent -> grid axis is parallel
            # (shards the batch across v7x's two TensorCores; no-op on
            # single-TC v5e/v6e).
            dimension_semantics=("parallel",),
            vmem_limit_bytes=vmem_limit,
        ),
    )(output1, output2, label)

    # Tiny final reductions in the wrapper (also avoids long serial f32
    # accumulation inside the kernel).
    loss = jnp.sum(per_row_loss) / (2.0 * B)      # mean(terms) / 2
    acc = jnp.sum(per_row_corr) / float(B)        # mean(correct)
    return loss, acc


if __name__ == "__main__":
    key = jax.random.PRNGKey(0)
    k1, k2, k3 = jax.random.split(key, 3)

    B, D = 8, 32
    output1 = jax.random.normal(k1, (B, D), dtype=jnp.float32)
    output2 = jax.random.normal(k2, (B, D), dtype=jnp.float32)
    label = jax.random.bernoulli(k3, p=0.5, shape=(B, 1)).astype(jnp.float32)

    loss, acc = contrastive_loss(output1, output2, label,
                                 margin=2.0, contrastive_thres=1.1)
    jax.block_until_ready((loss, acc))

    # Pure-JAX reference check (same math as the PyTorch module).
    diff = output1 - output2 + 1e-6
    d = jnp.sqrt(jnp.sum(diff * diff, axis=-1, keepdims=True))
    ref_loss = jnp.mean((1 - label) * d ** 2 / 2
                        + label * jnp.maximum(2.0 - d, 0.0) ** 2) / 2
    ref_acc = jnp.mean(((d > 1.1).astype(jnp.float32) == label).astype(jnp.float32))
    assert jnp.allclose(loss, ref_loss, rtol=1e-5, atol=1e-6), (loss, ref_loss)
    assert jnp.allclose(acc, ref_acc, rtol=1e-5, atol=1e-6), (acc, ref_acc)

    print("KERNEL_OK")
</pallas_src>

<mosaic_0001>
module attributes {stable_mosaic.version = 11 : i64} {
  func.func @_contrastive_kernel(%arg0: i32, %arg1: memref<8x32xf32, #tpu.memory_space<vmem>>, %arg2: memref<8x32xf32, #tpu.memory_space<vmem>>, %arg3: memref<8x1xf32, #tpu.memory_space<vmem>>, %arg4: memref<8x1xf32, #tpu.memory_space<vmem>>, %arg5: memref<8x1xf32, #tpu.memory_space<vmem>>) attributes {dimension_semantics = [#tpu.dimension_semantics<parallel>], iteration_bounds = array<i64: 1>, scalar_prefetch = 0 : i64, scratch_operands = 0 : i64, tpu.core_type = #tpu.core_type<tc>, window_params = [{transform_indices = @transform_0, window_bounds = array<i64: 8, 32>}, {transform_indices = @transform_1, window_bounds = array<i64: 8, 32>}, {transform_indices = @transform_2, window_bounds = array<i64: 8, 1>}, {transform_indices = @transform_3, window_bounds = array<i64: 8, 1>}, {transform_indices = @transform_4, window_bounds = array<i64: 8, 1>}]} {
    %c0 = arith.constant 0 : index
    %c0_0 = arith.constant 0 : index
    %0 = vector.load %arg1[%c0, %c0_0] : memref<8x32xf32, #tpu.memory_space<vmem>>, vector<8x32xf32>
    %c0_1 = arith.constant 0 : index
    %c0_2 = arith.constant 0 : index
    %1 = vector.load %arg2[%c0_1, %c0_2] : memref<8x32xf32, #tpu.memory_space<vmem>>, vector<8x32xf32>
    %c0_3 = arith.constant 0 : index
    %c0_4 = arith.constant 0 : index
    %2 = vector.load %arg3[%c0_3, %c0_4] : memref<8x1xf32, #tpu.memory_space<vmem>>, vector<8x1xf32>
    %3 = arith.subf %0, %1 : vector<8x32xf32>
    %cst = arith.constant 9.99999997E-7 : f32
    %4 = vector.broadcast %cst : f32 to vector<8x32xf32>
    %5 = arith.addf %3, %4 : vector<8x32xf32>
    %6 = arith.mulf %5, %5 : vector<8x32xf32>
    %cst_5 = arith.constant dense<0.000000e+00> : vector<8xf32>
    %7 = vector.multi_reduction <add>, %6, %cst_5 [1] : vector<8x32xf32> to vector<8xf32>
    %8 = vector.shape_cast %7 : vector<8xf32> to vector<8x1xf32>
    %9 = math.sqrt %8 : vector<8x1xf32>
    %cst_6 = arith.constant 1.000000e+00 : f32
    %10 = vector.broadcast %cst_6 : f32 to vector<8x1xf32>
    %11 = arith.subf %10, %2 : vector<8x1xf32>
    %12 = arith.mulf %11, %8 : vector<8x1xf32>
    %cst_7 = arith.constant 5.000000e-01 : f32
    %13 = vector.broadcast %cst_7 : f32 to vector<8x1xf32>
    %14 = arith.mulf %12, %13 : vector<8x1xf32>
    %cst_8 = arith.constant 2.000000e+00 : f32
    %15 = vector.broadcast %cst_8 : f32 to vector<8x1xf32>
    %16 = arith.subf %15, %9 : vector<8x1xf32>
    %cst_9 = arith.constant 0.000000e+00 : f32
    %17 = vector.broadcast %cst_9 : f32 to vector<8x1xf32>
    %18 = arith.maximumf %16, %17 : vector<8x1xf32>
    %19 = arith.mulf %18, %18 : vector<8x1xf32>
    %20 = arith.mulf %2, %19 : vector<8x1xf32>
    %21 = arith.addf %14, %20 : vector<8x1xf32>
    %c0_10 = arith.constant 0 : index
    %c0_11 = arith.constant 0 : index
    %22 = vector.load %arg4[%c0_10, %c0_11] : memref<8x1xf32, #tpu.memory_space<vmem>>, vector<8x1xf32>
    tpu.vector_store %arg4[%c0_10, %c0_11], %21 {strides = array<i32>} : memref<8x1xf32, #tpu.memory_space<vmem>>, vector<8x1xf32>,
    %cst_12 = arith.constant 1.100000e+00 : f32
    %23 = vector.broadcast %cst_12 : f32 to vector<8x1xf32>
    %24 = arith.cmpf ogt, %9, %23 : vector<8x1xf32>
    %25 = arith.extui %24 : vector<8x1xi1> to vector<8x1xi32>
    %26 = arith.sitofp %25 : vector<8x1xi32> to vector<8x1xf32>
    %27 = arith.cmpf oeq, %26, %2 : vector<8x1xf32>
    %28 = arith.extui %27 : vector<8x1xi1> to vector<8x1xi32>
    %29 = arith.sitofp %28 : vector<8x1xi32> to vector<8x1xf32>
    %c0_13 = arith.constant 0 : index
    %c0_14 = arith.constant 0 : index
    %30 = vector.load %arg5[%c0_13, %c0_14] : memref<8x1xf32, #tpu.memory_space<vmem>>, vector<8x1xf32>
    tpu.vector_store %arg5[%c0_13, %c0_14], %29 {strides = array<i32>} : memref<8x1xf32, #tpu.memory_space<vmem>>, vector<8x1xf32>,
    return
  }
  func.func @transform_0(%arg0: i32) -> (i32, i32) {
    %c0_i32 = arith.constant 0 : i32
    %c0_i32_0 = arith.constant 0 : i32
    return %arg0, %c0_i32 : i32, i32
  }
  func.func @transform_1(%arg0: i32) -> (i32, i32) {
    %c0_i32 = arith.constant 0 : i32
    %c0_i32_0 = arith.constant 0 : i32
    return %arg0, %c0_i32 : i32, i32
  }
  func.func @transform_2(%arg0: i32) -> (i32, i32) {
    %c0_i32 = arith.constant 0 : i32
    %c0_i32_0 = arith.constant 0 : i32
    return %arg0, %c0_i32 : i32, i32
  }
  func.func @transform_3(%arg0: i32) -> (i32, i32) {
    %c0_i32 = arith.constant 0 : i32
    %c0_i32_0 = arith.constant 0 : i32
    return %arg0, %c0_i32 : i32, i32
  }
  func.func @transform_4(%arg0: i32) -> (i32, i32) {
    %c0_i32 = arith.constant 0 : i32
    %c0_i32_0 = arith.constant 0 : i32
    return %arg0, %c0_i32 : i32, i32
  }
}

</mosaic_0001>

<bundles_post_ra>
// kernel: tpu_custom_call.1
= control target key start
LH: loop header
LB: loop body
LE: loop exit
PB: predicated region body
PF: predicated region fallthrough
CT: control target
= control target key end

     0   :  { %10 = vsyncpa [#allocation3], 0  ;;  %s101_s15 = smov [#allocation2]   ;;  %s152_s0 = inlined_call_operand.vmem [shape: f32[8,32], index: 0, kind: input, shape index: {}]   ;;  %s153_s1 = inlined_call_operand.hbm [shape: f32[8,32], index: 1, kind: input, shape index: {}]   ;;  %s154_s2 = inlined_call_operand.vmem [shape: f32[8,1], index: 2, kind: input, shape index: {}]   ;;  %s155_s3 = inlined_call_operand.vmem [shape: f32[8,1], index: 3, kind: output, shape index: {0}]   ;;  %s156_s4 = inlined_call_operand.vmem [shape: f32[8,1], index: 4, kind: output, shape index: {1}]  }
   0x1   :  { %s19_s16 = sshll.u32 %s101_s15, 4  ;;  %s77_s19 = scalar_lea.hbm %s153_s1, 128  ;;  %s20_s16 = int_to_ptr.vmem [resolvable:$true] %s19_s16 }
   0x2   :  { %p78_p0 = scmp.ne.s32.totalorder %s153_s1, %s77_s19  ;;  %p81_p1 = scmp.lt.u32.totalorder %s77_s19, %s153_s1 }
   0x4   :  { %p83_p2 = pnand %p81_p1, %p78_p0 }
   0x6   :  { %86 = shalt.err (!%p83_p2)
}
   0x7   :  { %s87_s24 = scalar_lea.vmem %s20_s16, 128  ;;  %p92_p4 = scmp.lt.s32.totalorder %s20_s16, %s20_s16 }
   0x8   :  { %p88_p3 = scmp.ne.s32.totalorder %s20_s16, %s87_s24  ;;  %p93_p5 = scmp.lt.s32.totalorder %s87_s24, %s87_s24 }
   0xa   :  { %p94_p6 = por %p93_p5, %p92_p4 }
   0xc   :  { %p95_p7 = pnand %p94_p6, %p88_p3 }
   0xe   :  { %98 = shalt.err (!%p95_p7)
}
   0xf   :  { %22 = dma.hbm_to_vmem [thread:$0]  %s153_s1, 128, %s20_s16, [#allocation3]  }
  0x10   :  { %99 = dma.done.wait [#allocation3], 128  }
  0x11   :  { %100 = vsyncadd [#allocation3], 4294967168  ;;  %v28_v0 = vld [vmem:[%s152_s0] sm:$0xff]  ;;  %vm34_vm0 = vcmask 261120   ;;  %vm53_vm4 = vcmask 7168   ;;  %v102_v15 = vmov 0.0  }
  0x12   :  { %v29_v1 = vld [vmem:[#allocation2] sm:$0xff] }
  0x13   :  { %v31_v2 = vsub.f32 %v28_v0, %v29_v1  ;;  %v30_v8 = vld [vmem:[%s154_s2] sm:$0xff] }
  0x14   :  { %v45_v12 = vsub.f32 1.0, %v30_v8 }
  0x15   :  { %v32_v3 = vadd.f32 1e-06, %v31_v2 }
  0x17   :  { %v33_v4 = vmul.f32 %v32_v3, %v32_v3 }
  0x19   :  { %v35_v5 = vsel %vm34_vm0, %v33_v4, 0.0 }
  0x1a   :  { %36 = vadd.xlane.f32.xlu0 %v35_v5 }
  0xa7   :  { %v37_v6 = vpop.xlane.xlu0 %36 }
  0xa8   :  { %75 = vrsqrt.f32 %v37_v6  ;;  %vm40_vm1 = vcmp.eq.f32.partialorder %v37_v6, inf  ;;  %v43_v10 = vand.u32 2147483648, %v37_v6  ;;  %vm42_vm2 = vcmp.eq.f32.partialorder %v37_v6, 0.0 }
  0xa9   :  { %v46_v17 = vmul.f32 %v45_v12, %v37_v6 }
  0xab   :  { %v47_v21 = vmul.f32 0.5, %v46_v17 }
  0xb2   :  { %v76_v7 = vpop.eup %75 }
  0xb3   :  { %v39_v9 = vmul.f32 %v76_v7, %v37_v6 }
  0xb5   :  { %v41_v11 = vsel %vm40_vm1, %v37_v6, %v39_v9 }
  0xb6   :  { %v44_v13 = vsel %vm42_vm2, %v43_v10, %v41_v11 }
  0xb7   :  { %v48_v14 = vsub.f32 2.0, %v44_v13  ;;  %vm55_vm3 = vcmp.gt.f32.partialorder %v44_v13, 1.1 }
  0xb8   :  { %v71_v16 = vsel %vm55_vm3, 1.0, %v102_v15 }
  0xb9   :  { %v49_v18 = vmax.f32 %v48_v14, 0.0  ;;  %vm58_vm5 = vcmp.eq.f32.partialorder %v71_v16, %v30_v8 }
  0xba   :  { %v72_v19 = vsel %vm58_vm5, 1.0, %v102_v15 }
  0xbb   :  { %v50_v20 = vmul.f32 %v49_v18, %v49_v18  ;;  %61 = vst.msk [vmem:[%s156_s4] sm:$0xff] %vm53_vm4, %v72_v19 }
  0xbd   :  { %v51_v22 = vmul.f32 %v50_v20, %v30_v8 }
  0xbf   :  { %v52_v23 = vadd.f32 %v51_v22, %v47_v21 }
  0xc1   :  { %54 = vst.msk [vmem:[%s155_s3] sm:$0xff] %vm53_vm4, %v52_v23 }
  0xc2   :  { %70 = vsyncpa [#allocation3], 1 }

</bundles_post_ra>
